<compile_context>
chip_gen: v5e
topology: v5e:2x2
jax: 0.10.0
libtpu: 0.0.40
codegen_flags: <defaults>
</compile_context>

<pallas_src>
import jax
import jax.numpy as jnp
from jax import lax
from jax.experimental import pallas as pl
from jax.experimental.pallas import tpu as pltpu


# ---------------------------------------------------------------------------
# Pallas kernel: fused 4-layer MLP (3 -> 128 -> 128 -> 128 -> 2) with ReLUs.
# ---------------------------------------------------------------------------
def _mlp_kernel(x_ref,
                w1_ref, b1_ref,
                w2_ref, b2_ref,
                w3_ref, b3_ref,
                w4t_ref, b4_ref,
                o_ref):
    x = x_ref[...].astype(jnp.float32)            # (tm, d_in)
    w1 = w1_ref[...]                              # (d_in, H)  f32
    d_in = x.shape[1]

    # ---- Layer 1: K = d_in (tiny) -> VPU broadcast multiply-adds in f32. ----
    h = x[:, 0:1] * w1[0:1, :]
    for c in range(1, d_in):                      # d_in is static (== 3)
        h = h + x[:, c:c + 1] * w1[c:c + 1, :]
    h = jnp.maximum(h + b1_ref[...], 0.0)         # (tm, H) f32

    # ---- Layers 2 & 3: bf16 MXU matmuls, f32 accumulation / bias / ReLU. ----
    h = jnp.dot(h.astype(jnp.bfloat16), w2_ref[...],
                preferred_element_type=jnp.float32) + b2_ref[...]
    h = jnp.maximum(h, 0.0)

    h = jnp.dot(h.astype(jnp.bfloat16), w3_ref[...],
                preferred_element_type=jnp.float32) + b3_ref[...]
    h = jnp.maximum(h, 0.0)

    # ---- Layer 4: lane-dense (d_out, tm) output tile. -----------------------
    # w4t is (d_out, H); contract both operands over H ('od,td->ot').
    out = lax.dot_general(
        w4t_ref[...], h.astype(jnp.bfloat16),
        dimension_numbers=(((1,), (1,)), ((), ())),
        preferred_element_type=jnp.float32)       # (d_out, tm)
    o_ref[...] = (out + b4_ref[...]).astype(o_ref.dtype)


def mlp_wrapper_forward(x, params, *, block_m=2048):
    """Apply the MLP_wrapper forward pass with a fused Pallas kernel.

    x:      (N, d_in) float32
    params: dict 'w1'..'w4' stored as (in, out) (= PyTorch weight.T) and
            'b1'..'b4' with shape (1, out).
    returns (N, d_out) float32
    """
    n, d_in = x.shape
    d_out = params["w4"].shape[1]

    # Batch tile. Single block -> tile == full extent (always layout-legal,
    # no padding needed). Multi block -> tile is a multiple of 128 so the x
    # row tile is sublane-aligned and the (d_out, tm) output tile is
    # lane-dense; the ragged boundary block is handled by Pallas.
    if n <= block_m:
        tm = n
    else:
        tm = max(128, (block_m // 128) * 128)
    grid = (pl.cdiv(n, tm),)

    # One-time operand prep (outside the kernel): bf16 weights for the MXU
    # layers, transposed last layer for the lane-dense output, f32 layer-1
    # weights and all biases for the VPU path.
    w1 = params["w1"].astype(jnp.float32)
    b1 = params["b1"].astype(jnp.float32)
    w2 = params["w2"].astype(jnp.bfloat16)
    b2 = params["b2"].astype(jnp.float32)
    w3 = params["w3"].astype(jnp.bfloat16)
    b3 = params["b3"].astype(jnp.float32)
    w4t = params["w4"].T.astype(jnp.bfloat16)              # (d_out, hidden)
    b4 = params["b4"].reshape(d_out, 1).astype(jnp.float32)

    def full_spec(arr):
        return pl.BlockSpec(arr.shape, lambda i: (0,) * arr.ndim)

    out_t = pl.pallas_call(
        _mlp_kernel,
        out_shape=jax.ShapeDtypeStruct((d_out, n), jnp.float32),
        grid_spec=pltpu.PrefetchScalarGridSpec(
            num_scalar_prefetch=0,
            grid=grid,
            in_specs=[
                pl.BlockSpec((tm, d_in), lambda i: (i, 0)),
                full_spec(w1), full_spec(b1),
                full_spec(w2), full_spec(b2),
                full_spec(w3), full_spec(b3),
                full_spec(w4t), full_spec(b4),
            ],
            out_specs=pl.BlockSpec((d_out, tm), lambda i: (0, i)),
        ),
        compiler_params=pltpu.CompilerParams(
            dimension_semantics=("parallel",),
            vmem_limit_bytes=32 * 1024 * 1024),
    )(x, w1, b1, w2, b2, w3, b3, w4t, b4)

    return out_t.T                                          # (n, d_out)


# ---------------------------------------------------------------------------
# Deterministic parameter initialization (PyTorch nn.Linear-style uniform).
# ---------------------------------------------------------------------------
def init_params(key, input_dim=3, hidden_dim=128, output_dim=2):
    dims = [(input_dim, hidden_dim),
            (hidden_dim, hidden_dim),
            (hidden_dim, hidden_dim),
            (hidden_dim, output_dim)]
    params = {}
    for idx, (fan_in, fan_out) in enumerate(dims, start=1):
        key, kw, kb = jax.random.split(key, 3)
        bound = 1.0 / jnp.sqrt(fan_in)
        # Stored as (in, out) = PyTorch weight.T so the kernel can do x @ W.
        params[f"w{idx}"] = jax.random.uniform(
            kw, (fan_in, fan_out), jnp.float32, -bound, bound)
        params[f"b{idx}"] = jax.random.uniform(
            kb, (1, fan_out), jnp.float32, -bound, bound)
    return params


def mlp_reference(x, params):
    """Full-f32 reference of the module semantics."""
    dot = lambda a, b: jnp.dot(a, b, precision=lax.Precision.HIGHEST)
    h = jnp.maximum(dot(x, params["w1"]) + params["b1"], 0.0)
    h = jnp.maximum(dot(h, params["w2"]) + params["b2"], 0.0)
    h = jnp.maximum(dot(h, params["w3"]) + params["b3"], 0.0)
    return dot(h, params["w4"]) + params["b4"]


def mlp_reference_kernel_numerics(x, params):
    """Plain-JAX reference mirroring the kernel numerics
    (f32 VPU layer 1, bf16 MXU matmuls with f32 accumulation)."""
    w1 = params["w1"]
    h = x[:, 0:1] * w1[0:1, :]
    for c in range(1, x.shape[1]):
        h = h + x[:, c:c + 1] * w1[c:c + 1, :]
    h = jnp.maximum(h + params["b1"], 0.0)
    h = jnp.dot(h.astype(jnp.bfloat16), params["w2"].astype(jnp.bfloat16),
                preferred_element_type=jnp.float32) + params["b2"]
    h = jnp.maximum(h, 0.0)
    h = jnp.dot(h.astype(jnp.bfloat16), params["w3"].astype(jnp.bfloat16),
                preferred_element_type=jnp.float32) + params["b3"]
    h = jnp.maximum(h, 0.0)
    return jnp.dot(h.astype(jnp.bfloat16), params["w4"].astype(jnp.bfloat16),
                   preferred_element_type=jnp.float32) + params["b4"]


if __name__ == "__main__":
    key = jax.random.PRNGKey(0)
    k_param, k_x = jax.random.split(key)

    input_dim = 3    # MLP_wrapper.input_dim = mlp.input_dim + time_dim = 2 + 1
    hidden_dim = 128
    output_dim = 2
    batch = 8

    params = init_params(k_param, input_dim, hidden_dim, output_dim)
    x = jax.random.normal(k_x, (batch, input_dim), jnp.float32)

    out = mlp_wrapper_forward(x, params)
    out = jax.block_until_ready(out)
    assert out.shape == (batch, output_dim)

    # Tight check vs. a reference that matches the kernel's bf16/f32 mix.
    ref_match = mlp_reference_kernel_numerics(x, params)
    assert jnp.allclose(out, ref_match, atol=1e-3, rtol=1e-3), \
        "mismatch vs numerics-matched reference"

    # Loose check vs. the exact-f32 module semantics (bf16 matmul operands).
    ref_f32 = mlp_reference(x, params)
    assert jnp.allclose(out, ref_f32, atol=5e-2, rtol=5e-2), \
        "mismatch vs f32 reference"

    print("KERNEL_OK")
</pallas_src>

<mosaic_0001>
module attributes {stable_mosaic.version = 11 : i64} {
  func.func @_mlp_kernel(%arg0: i32, %arg1: memref<8x3xf32, #tpu.memory_space<vmem>>, %arg2: memref<3x128xf32, #tpu.memory_space<vmem>>, %arg3: memref<1x128xf32, #tpu.memory_space<vmem>>, %arg4: memref<128x128xbf16, #tpu.memory_space<vmem>>, %arg5: memref<1x128xf32, #tpu.memory_space<vmem>>, %arg6: memref<128x128xbf16, #tpu.memory_space<vmem>>, %arg7: memref<1x128xf32, #tpu.memory_space<vmem>>, %arg8: memref<2x128xbf16, #tpu.memory_space<vmem>>, %arg9: memref<2x1xf32, #tpu.memory_space<vmem>>, %arg10: memref<2x8xf32, #tpu.memory_space<vmem>>) attributes {dimension_semantics = [#tpu.dimension_semantics<parallel>], iteration_bounds = array<i64: 1>, scalar_prefetch = 0 : i64, scratch_operands = 0 : i64, tpu.core_type = #tpu.core_type<tc>, window_params = [{transform_indices = @transform_0, window_bounds = array<i64: 8, 3>}, {pipeline_mode = #tpu.pipeline_mode<synchronous>, transform_indices = @transform_1, window_bounds = array<i64: 3, 128>}, {pipeline_mode = #tpu.pipeline_mode<synchronous>, transform_indices = @transform_2, window_bounds = array<i64: 1, 128>}, {pipeline_mode = #tpu.pipeline_mode<synchronous>, transform_indices = @transform_3, window_bounds = array<i64: 128, 128>}, {pipeline_mode = #tpu.pipeline_mode<synchronous>, transform_indices = @transform_4, window_bounds = array<i64: 1, 128>}, {pipeline_mode = #tpu.pipeline_mode<synchronous>, transform_indices = @transform_5, window_bounds = array<i64: 128, 128>}, {pipeline_mode = #tpu.pipeline_mode<synchronous>, transform_indices = @transform_6, window_bounds = array<i64: 1, 128>}, {pipeline_mode = #tpu.pipeline_mode<synchronous>, transform_indices = @transform_7, window_bounds = array<i64: 2, 128>}, {pipeline_mode = #tpu.pipeline_mode<synchronous>, transform_indices = @transform_8, window_bounds = array<i64: 2, 1>}, {transform_indices = @transform_9, window_bounds = array<i64: 2, 8>}]} {
    %c0 = arith.constant 0 : index
    %c0_0 = arith.constant 0 : index
    %0 = vector.load %arg1[%c0, %c0_0] : memref<8x3xf32, #tpu.memory_space<vmem>>, vector<8x3xf32>
    %c0_1 = arith.constant 0 : index
    %c0_2 = arith.constant 0 : index
    %1 = vector.load %arg2[%c0_1, %c0_2] : memref<3x128xf32, #tpu.memory_space<vmem>>, vector<3x128xf32>
    %2 = vector.extract_strided_slice %0 {offsets = [0, 0], sizes = [8, 1], strides = [1, 1]} : vector<8x3xf32> to vector<8x1xf32>
    %3 = vector.extract_strided_slice %1 {offsets = [0, 0], sizes = [1, 128], strides = [1, 1]} : vector<3x128xf32> to vector<1x128xf32>
    %4 = vector.broadcast %2 : vector<8x1xf32> to vector<8x128xf32>
    %5 = vector.broadcast %3 : vector<1x128xf32> to vector<8x128xf32>
    %6 = arith.mulf %4, %5 : vector<8x128xf32>
    %7 = vector.extract_strided_slice %0 {offsets = [0, 1], sizes = [8, 1], strides = [1, 1]} : vector<8x3xf32> to vector<8x1xf32>
    %8 = vector.extract_strided_slice %1 {offsets = [1, 0], sizes = [1, 128], strides = [1, 1]} : vector<3x128xf32> to vector<1x128xf32>
    %9 = vector.broadcast %7 : vector<8x1xf32> to vector<8x128xf32>
    %10 = vector.broadcast %8 : vector<1x128xf32> to vector<8x128xf32>
    %11 = arith.mulf %9, %10 : vector<8x128xf32>
    %12 = arith.addf %6, %11 : vector<8x128xf32>
    %13 = vector.extract_strided_slice %0 {offsets = [0, 2], sizes = [8, 1], strides = [1, 1]} : vector<8x3xf32> to vector<8x1xf32>
    %14 = vector.extract_strided_slice %1 {offsets = [2, 0], sizes = [1, 128], strides = [1, 1]} : vector<3x128xf32> to vector<1x128xf32>
    %15 = vector.broadcast %13 : vector<8x1xf32> to vector<8x128xf32>
    %16 = vector.broadcast %14 : vector<1x128xf32> to vector<8x128xf32>
    %17 = arith.mulf %15, %16 : vector<8x128xf32>
    %18 = arith.addf %12, %17 : vector<8x128xf32>
    %c0_3 = arith.constant 0 : index
    %c0_4 = arith.constant 0 : index
    %19 = vector.load %arg3[%c0_3, %c0_4] : memref<1x128xf32, #tpu.memory_space<vmem>>, vector<1x128xf32>
    %20 = vector.broadcast %19 : vector<1x128xf32> to vector<8x128xf32>
    %21 = arith.addf %18, %20 : vector<8x128xf32>
    %cst = arith.constant 0.000000e+00 : f32
    %22 = vector.broadcast %cst : f32 to vector<8x128xf32>
    %23 = arith.maximumf %21, %22 : vector<8x128xf32>
    %24 = arith.truncf %23 : vector<8x128xf32> to vector<8x128xbf16>
    %c0_5 = arith.constant 0 : index
    %c0_6 = arith.constant 0 : index
    %25 = vector.load %arg4[%c0_5, %c0_6] : memref<128x128xbf16, #tpu.memory_space<vmem>>, vector<128x128xbf16>
    %cst_7 = arith.constant dense<0.000000e+00> : vector<8x128xf32>
    %26 = tpu.matmul %24, %25, %cst_7 {dimension_numbers = #tpu.dot_dimension_numbers<[1], [0], [0], [1], [0, 0, 1, 1], [], []>} : vector<8x128xbf16>, vector<128x128xbf16>, vector<8x128xf32> -> vector<8x128xf32>
    %c0_8 = arith.constant 0 : index
    %c0_9 = arith.constant 0 : index
    %27 = vector.load %arg5[%c0_8, %c0_9] : memref<1x128xf32, #tpu.memory_space<vmem>>, vector<1x128xf32>
    %28 = vector.broadcast %27 : vector<1x128xf32> to vector<8x128xf32>
    %29 = arith.addf %26, %28 : vector<8x128xf32>
    %cst_10 = arith.constant 0.000000e+00 : f32
    %30 = vector.broadcast %cst_10 : f32 to vector<8x128xf32>
    %31 = arith.maximumf %29, %30 : vector<8x128xf32>
    %32 = arith.truncf %31 : vector<8x128xf32> to vector<8x128xbf16>
    %c0_11 = arith.constant 0 : index
    %c0_12 = arith.constant 0 : index
    %33 = vector.load %arg6[%c0_11, %c0_12] : memref<128x128xbf16, #tpu.memory_space<vmem>>, vector<128x128xbf16>
    %cst_13 = arith.constant dense<0.000000e+00> : vector<8x128xf32>
    %34 = tpu.matmul %32, %33, %cst_13 {dimension_numbers = #tpu.dot_dimension_numbers<[1], [0], [0], [1], [0, 0, 1, 1], [], []>} : vector<8x128xbf16>, vector<128x128xbf16>, vector<8x128xf32> -> vector<8x128xf32>
    %c0_14 = arith.constant 0 : index
    %c0_15 = arith.constant 0 : index
    %35 = vector.load %arg7[%c0_14, %c0_15] : memref<1x128xf32, #tpu.memory_space<vmem>>, vector<1x128xf32>
    %36 = vector.broadcast %35 : vector<1x128xf32> to vector<8x128xf32>
    %37 = arith.addf %34, %36 : vector<8x128xf32>
    %cst_16 = arith.constant 0.000000e+00 : f32
    %38 = vector.broadcast %cst_16 : f32 to vector<8x128xf32>
    %39 = arith.maximumf %37, %38 : vector<8x128xf32>
    %c0_17 = arith.constant 0 : index
    %c0_18 = arith.constant 0 : index
    %40 = vector.load %arg8[%c0_17, %c0_18] : memref<2x128xbf16, #tpu.memory_space<vmem>>, vector<2x128xbf16>
    %41 = arith.truncf %39 : vector<8x128xf32> to vector<8x128xbf16>
    %cst_19 = arith.constant dense<0.000000e+00> : vector<2x8xf32>
    %42 = tpu.matmul %40, %41, %cst_19 {dimension_numbers = #tpu.dot_dimension_numbers<[1], [1], [0], [0], [0, 0, 1, 0], [], []>} : vector<2x128xbf16>, vector<8x128xbf16>, vector<2x8xf32> -> vector<2x8xf32>
    %c0_20 = arith.constant 0 : index
    %c0_21 = arith.constant 0 : index
    %43 = vector.load %arg9[%c0_20, %c0_21] : memref<2x1xf32, #tpu.memory_space<vmem>>, vector<2x1xf32>
    %44 = vector.broadcast %43 : vector<2x1xf32> to vector<2x8xf32>
    %45 = arith.addf %42, %44 : vector<2x8xf32>
    %c0_22 = arith.constant 0 : index
    %c0_23 = arith.constant 0 : index
    %46 = vector.load %arg10[%c0_22, %c0_23] : memref<2x8xf32, #tpu.memory_space<vmem>>, vector<2x8xf32>
    tpu.vector_store %arg10[%c0_22, %c0_23], %45 {strides = array<i32>} : memref<2x8xf32, #tpu.memory_space<vmem>>, vector<2x8xf32>,
    return
  }
  func.func @transform_0(%arg0: i32) -> (i32, i32) {
    %c0_i32 = arith.constant 0 : i32
    %c0_i32_0 = arith.constant 0 : i32
    return %arg0, %c0_i32 : i32, i32
  }
  func.func @transform_1(%arg0: i32) -> (i32, i32) {
    %c0_i32 = arith.constant 0 : i32
    %c0_i32_0 = arith.constant 0 : i32
    %c0_i32_1 = arith.constant 0 : i32
    return %c0_i32, %c0_i32_0 : i32, i32
  }
  func.func @transform_2(%arg0: i32) -> (i32, i32) {
    %c0_i32 = arith.constant 0 : i32
    %c0_i32_0 = arith.constant 0 : i32
    %c0_i32_1 = arith.constant 0 : i32
    return %c0_i32, %c0_i32_0 : i32, i32
  }
  func.func @transform_3(%arg0: i32) -> (i32, i32) {
    %c0_i32 = arith.constant 0 : i32
    %c0_i32_0 = arith.constant 0 : i32
    %c0_i32_1 = arith.constant 0 : i32
    return %c0_i32, %c0_i32_0 : i32, i32
  }
  func.func @transform_4(%arg0: i32) -> (i32, i32) {
    %c0_i32 = arith.constant 0 : i32
    %c0_i32_0 = arith.constant 0 : i32
    %c0_i32_1 = arith.constant 0 : i32
    return %c0_i32, %c0_i32_0 : i32, i32
  }
  func.func @transform_5(%arg0: i32) -> (i32, i32) {
    %c0_i32 = arith.constant 0 : i32
    %c0_i32_0 = arith.constant 0 : i32
    %c0_i32_1 = arith.constant 0 : i32
    return %c0_i32, %c0_i32_0 : i32, i32
  }
  func.func @transform_6(%arg0: i32) -> (i32, i32) {
    %c0_i32 = arith.constant 0 : i32
    %c0_i32_0 = arith.constant 0 : i32
    %c0_i32_1 = arith.constant 0 : i32
    return %c0_i32, %c0_i32_0 : i32, i32
  }
  func.func @transform_7(%arg0: i32) -> (i32, i32) {
    %c0_i32 = arith.constant 0 : i32
    %c0_i32_0 = arith.constant 0 : i32
    %c0_i32_1 = arith.constant 0 : i32
    return %c0_i32, %c0_i32_0 : i32, i32
  }
  func.func @transform_8(%arg0: i32) -> (i32, i32) {
    %c0_i32 = arith.constant 0 : i32
    %c0_i32_0 = arith.constant 0 : i32
    %c0_i32_1 = arith.constant 0 : i32
    return %c0_i32, %c0_i32_0 : i32, i32
  }
  func.func @transform_9(%arg0: i32) -> (i32, i32) {
    %c0_i32 = arith.constant 0 : i32
    %c0_i32_0 = arith.constant 0 : i32
    return %c0_i32, %arg0 : i32, i32
  }
}

</mosaic_0001>

<bundles_post_ra>
// kernel: tpu_custom_call.1
= control target key start
LH: loop header
LB: loop body
LE: loop exit
PB: predicated region body
PF: predicated region fallthrough
CT: control target
= control target key end

     0   :  { %14 = vsyncpa [#allocation3], 0  ;;  %s564_s0 = inlined_call_operand.vmem [shape: f32[8,3], index: 0, kind: input, shape index: {}]   ;;  %s565_s1 = inlined_call_operand.vmem [shape: f32[3,128], index: 1, kind: input, shape index: {}]   ;;  %s566_s2 = inlined_call_operand.vmem [shape: f32[1,128], index: 2, kind: input, shape index: {}]   ;;  %s567_s3 = inlined_call_operand.hbm [shape: bf16[128,128], index: 3, kind: input, shape index: {}]   ;;  %s568_s4 = inlined_call_operand.vmem [shape: f32[1,128], index: 4, kind: input, shape index: {}]   ;;  %s569_s5 = inlined_call_operand.hbm [shape: bf16[128,128], index: 5, kind: input, shape index: {}]   ;;  %s570_s6 = inlined_call_operand.vmem [shape: f32[1,128], index: 6, kind: input, shape index: {}]   ;;  %s571_s7 = inlined_call_operand.vmem [shape: bf16[2,128], index: 7, kind: input, shape index: {}]   ;;  %s572_s8 = inlined_call_operand.vmem [shape: f32[2,1], index: 8, kind: input, shape index: {}]   ;;  %s573_s9 = inlined_call_operand.hbm [shape: f32[2,8], index: 9, kind: output, shape index: {}]  }
   0x1   :  { %15 = vsyncpa [#allocation6], 0 }
   0x2   :  { %16 = vsyncpa [#allocation4], 0  ;;  %s27_s11 = sshll.u32 %s567_s3, 4  ;;  %s476_s12 = smov [#allocation2]   ;;  %s28_s11 = int_to_ptr.hbm [resolvable:$true] %s27_s11 }
   0x3   :  { %s29_s13 = sshll.u32 %s476_s12, 4  ;;  %s42_s16 = sshll.u32 %s569_s5, 4  ;;  %s30_s13 = int_to_ptr.vmem [resolvable:$true] %s29_s13  ;;  %s43_s16 = int_to_ptr.hbm [resolvable:$true] %s42_s16 }
   0x4   :  { %s477_s17 = smov 64   ;;  %s478_s18 = smov 4  }
   0x5   :  { %35 = dma.hbm_to_vmem [thread:$0]  %s28_s11, 1024, %s30_s13, [#allocation3], %s477_s17, %s477_s17, %s478_s18  }
   0x6   :  { %s479_s19 = smov [#allocation5]  }
   0x7   :  { %s44_s20 = sshll.u32 %s479_s19, 4  ;;  %s45_s20 = int_to_ptr.vmem [resolvable:$true] %s44_s20 }
   0x8   :  { %50 = dma.hbm_to_vmem [thread:$0]  %s43_s16, 1024, %s45_s20, [#allocation6], %s477_s17, %s477_s17, %s478_s18  }
   0x9   :  { %470 = dma.done.wait [#allocation3], 1024  }
   0xa   :  { %471 = vsyncadd [#allocation3], 4294966272 }
   0xb   :  { %472 = dma.done.wait [#allocation6], 1024  }
   0xc   :  { %473 = vsyncadd [#allocation6], 4294966272  ;;  %v480_v0 = vmov 0   ;;  %v481_v1 = vmov 2   ;;  %v66_v2 = vld [vmem:[%s564_s0] sm:$0xff]  ;;  %v373_v3 = vld [vmem:[#allocation2 + $0x38] sm:$0xff] }
   0xd   :  { %390 = vset.pattern.permute.xlu0 %v480_v0  ;;  %392 = vset.pattern.permute.xlu1 %v481_v1  ;;  %v372_v4 = vld [vmem:[#allocation2 + $0x30] sm:$0xff]  ;;  %v371_v5 = vld [vmem:[#allocation2 + $0x28] sm:$0xff]  ;;  %v482_v6 = vmov 1   ;;  %v370_v7 = vld [vmem:[#allocation2 + $0x20] sm:$0xff]  ;;  %s483_s29 = smov [#allocation7]   ;;  %s291_s11 = sshll.u32 %s573_s9, 4  ;;  %s292_s11 = int_to_ptr.hbm [resolvable:$true] %s291_s11 }
   0xe   :  { %70 = vperm.xlu0 %390, %v66_v2   ;;  %83 = vperm.xlu1 %392, %v66_v2   ;;  %v369_v8 = vld [vmem:[#allocation2 + $0x18] sm:$0xff]  ;;  %v368_v9 = vld [vmem:[#allocation2 + $0x10] sm:$0xff]  ;;  %v367_v10 = vld [vmem:[#allocation2 + $0x8] sm:$0xff]  ;;  %s289_s30 = sshll.u32 %s483_s29, 4  ;;  %vm282_vm0 = vcmask 58368   ;;  %s290_s30 = int_to_ptr.vmem [resolvable:$true] %s289_s30 }
   0xf   :  { %164 = vmatpush.bf16.msra.mxu0 %v373_v3  ;;  %v366_v11 = vld [vmem:[#allocation2] sm:$0xff]  ;;  %v381_v12 = vld [vmem:[#allocation5 + $0x38] sm:$0xff]  ;;  %v380_v13 = vld [vmem:[#allocation5 + $0x30] sm:$0xff] }
  0x10   :  { %247 = vmatpush.bf16.msra.mxu1 %v381_v12  ;;  %v379_v14 = vld [vmem:[#allocation5 + $0x28] sm:$0xff]  ;;  %v378_v16 = vld [vmem:[#allocation5 + $0x20] sm:$0xff]  ;;  %v377_v18 = vld [vmem:[#allocation5 + $0x18] sm:$0xff] }
  0x11   :  { %v67_v17 = vld [vmem:[%s565_s1] sm:$0x7]  ;;  %v376_v23 = vld [vmem:[#allocation5 + $0x10] sm:$0xff]  ;;  %v375_v34 = vld [vmem:[#allocation5 + $0x8] sm:$0xff] }
  0x12   :  { %v73_v19 = vperm.slane %v67_v17, 0  ;;  %v79_v20 = vperm.slane %v67_v17, 1  ;;  %v86_v21 = vperm.slane %v67_v17, 2  ;;  %v395_v29 = vld [vmem:[%s566_s2] ss:$0 sm:$0xff] }
  0x13   :  { %165 = vmatpush.bf16.msra.mxu0 %v372_v4  ;;  %v374_v35 = vld [vmem:[#allocation5] sm:$0xff] }
  0x14   :  { %248 = vmatpush.bf16.msra.mxu1 %v380_v13  ;;  %v396_v36 = vld [vmem:[%s568_s4] ss:$0 sm:$0xff] }
  0x15   :  { %v263_v42 = vld [vmem:[%s572_s8] sm:$0x3] }
  0x16   :  { %391 = vset.pattern.permute.xlu0 %v482_v6  ;;  %393 = vset.pattern.permute.xlu1 %v480_v0  ;;  %v397_v43 = vld [vmem:[%s570_s6] ss:$0 sm:$0xff] }
  0x17   :  { %76 = vperm.xlu0 %391, %v66_v2   ;;  %166 = vmatpush.bf16.msra.mxu0 %v371_v5  ;;  %v261_v49 = vld [vmem:[%s571_s7] sm:$0x1] }
  0x18   :  { %249 = vmatpush.bf16.msra.mxu1 %v379_v14  ;;  %266 = vperm.xlu1 %393, %v263_v42  }
  0x1b   :  { %167 = vmatpush.bf16.msra.mxu0 %v370_v7 }
  0x1c   :  { %250 = vmatpush.bf16.msra.mxu1 %v378_v16 }
  0x1f   :  { %394 = vset.pattern.permute.xlu0 %v480_v0  ;;  %168 = vmatpush.bf16.msra.mxu0 %v369_v8 }
  0x20   :  { %251 = vmatpush.bf16.msra.mxu1 %v377_v18 }
  0x23   :  { %169 = vmatpush.bf16.msra.mxu0 %v368_v9 }
  0x24   :  { %252 = vmatpush.bf16.msra.mxu1 %v376_v23 }
  0x27   :  { %170 = vmatpush.bf16.msra.mxu0 %v367_v10 }
  0x28   :  { %253 = vmatpush.bf16.msra.mxu1 %v375_v34 }
  0x2b   :  { %171 = vmatpush.bf16.msra.mxu0 %v366_v11 }
  0x2c   :  { %254 = vmatpush.bf16.msra.mxu1 %v374_v35 }
  0x80   :  { %v71_v15 = vpop.permute.xlu0 %70  ;;  %v84_v22 = vpop.permute.xlu1 %83 }
  0x81   :  { %v74_v25 = vmul.f32 %v73_v19, %v71_v15  ;;  %v87_v27 = vmul.f32 %v86_v21, %v84_v22 }
  0x89   :  { %v77_v24 = vpop.permute.xlu0 %76 }
  0x8a   :  { %v80_v26 = vmul.f32 %v79_v20, %v77_v24  ;;  %v267_v50 = vpop.permute.xlu1 %266 }
  0x8c   :  { %v81_v28 = vadd.f32 %v80_v26, %v74_v25 }
  0x8e   :  { %v88_v30 = vadd.f32 %v87_v27, %v81_v28 }
  0x90   :  { %v93_v31 = vadd.f32 %v395_v29, %v88_v30 }
  0x92   :  { %v94_v32 = vmax.f32 %v93_v31, 0.0 }
  0x94   :  { %v95_v33 = vpack.c.bf16 %v94_v32, %v94_v32 }
  0x96   :  { %172 = vmatmul.bf16.vlgmr.msra.gmra.mxu0 %v95_v33 }
 0x113   :  { %v173_v37 = vpop.f32.mrf.mxu0 }
 0x114   :  { %v174_v38 = vadd.f32 %v396_v36, %v173_v37 }
 0x116   :  { %v177_v39 = vmax.f32 %v174_v38, 0.0 }
 0x118   :  { %v178_v40 = vpack.c.bf16 %v177_v39, %v177_v39 }
 0x11a   :  { %255 = vmatmul.bf16.vlgmr.msra.gmra.mxu1 %v178_v40 }
 0x11b   :  { %v175_v41 = vpop.f32.mrf.mxu0 }
 0x197   :  { %v256_v44 = vpop.f32.mrf.mxu1 }
 0x198   :  { %v257_v45 = vadd.f32 %v397_v43, %v256_v44 }
 0x19a   :  { %v260_v46 = vmax.f32 %v257_v45, 0.0 }
 0x19c   :  { %v262_v47 = vpack.c.bf16 %v260_v46, %v260_v46 }
 0x19e   :  { %276 = vmatpush.bf16.xpose.msra.mxu2 %v262_v47 }
 0x19f   :  { %v258_v48 = vpop.f32.mrf.mxu1 }
 0x1a5   :  { %277 = vmatmul.bf16.vlgmr.msra.gmra.mxu2 %v261_v49 }
 0x228   :  { %v278_v51 = vpop.f32.mrf.mxu2 }
 0x229   :  { %v279_v52 = vadd.f32 %v278_v51, %v267_v50 }
 0x22b   :  { %283 = vst.msk [vmem:[#allocation7] sm:$0x3] %vm282_vm0, %v279_v52 }
 0x22c   :  { %294 = dma.vmem_to_hbm [thread:$0]  %s290_s30, 32, %s292_s11, [#allocation4]  }
 0x230   :  { %v280_v53 = vpop.f32.mrf.mxu2 }
 0x231   :  { %474 = dma.done.wait [#allocation4], 32  }
 0x232   :  { %475 = vsyncadd [#allocation4], 4294967264 }
 0x233   :  { %299 = vsyncpa [#allocation3], 1 }
 0x234   :  { %300 = vsyncpa [#allocation6], 1 }
 0x235   :  { %301 = vsyncpa [#allocation4], 1 }

</bundles_post_ra>
